<compile_context>
chip_gen: v7x
topology: tpu7x:2x2x1
jax: 0.10.0
libtpu: 0.0.40
codegen_flags: <defaults>
</compile_context>

<pallas_src>
import functools

import jax
import jax.numpy as jnp
import numpy as np
from jax.experimental import pallas as pl
from jax.experimental.pallas import tpu as pltpu


def _attention_filtration_kernel(x_ref, w_ref, b_ref, o_ref, *,
                                 batch, length, use_segmented):
    """Whole forward pass fused in one kernel."""
    x = x_ref[...]                      # (B*L, D) f32, lane-dense
    w = w_ref[...]                      # (D, 1)   f32
    b = b_ref[0]                        # scalar   f32 (SMEM)

    B, L = batch, length
    BL = B * L
    n = float(BL)

    # (1) Linear(D -> 1) on the MXU: (B*L, D) @ (D, 1) -> (B*L, 1)
    s_col = jnp.dot(x, w, preferred_element_type=jnp.float32) + b

    if use_segmented:
        # Keep the column layout: it is exactly what the per-row scaling of x
        # needs below, so no relayout is required on this path.
        s = s_col                                    # (B*L, 1)
    else:
        # One explicit relayout to a lane-dense row; every elementwise/EUP op
        # of the BN chain then touches ~BL/128 vregs instead of ~BL/8 nearly
        # empty ones, and the row feeds the mask-fold as a sublane broadcast.
        s = s_col.reshape(1, BL)                     # (1, B*L)

    # (2) BatchNorm1d(1), training mode: biased batch stats over all B*L
    #     elements, gamma=1, beta=0, eps=1e-5.  Single pass: accumulate sum
    #     and sum-of-squares together (safe for O(1)-magnitude activations).
    ssum = jnp.sum(s)
    sqsum = jnp.sum(s * s)
    mean = ssum / n
    var = sqsum / n - mean * mean
    inv_std = jax.lax.rsqrt(var + 1e-5)
    g = jax.nn.sigmoid((s - mean) * inv_std)         # same shape as s, > 0

    if use_segmented:
        # (3a) O(B*L*D) segmented reduce: gate the rows of x (VPU broadcast
        #      over lanes), view as (B, L, D) -- layout-preserving when
        #      L % 8 == 0 -- and sum over L.  sigmoid > 0, so the per-batch
        #      sum of g is the l1norm denominator.
        x3 = x.reshape(B, L, D)
        g3 = g.reshape(B, L, 1)
        denom = jnp.sum(g3, axis=1) + 1e-8            # (B, 1)
        saf = jnp.sum(x3 * g3, axis=1) / denom        # (B, D)
    else:
        # (3b) Masked-matmul aggregation (small/medium B): fold the gate into
        #      the 0/1 batch-membership mask so only ONE MXU matmul and no
        #      x-sized temporary are needed.
        #      mask_g[bi, j] = g[j] if flattened row j belongs to batch bi.
        row = jax.lax.broadcasted_iota(jnp.int32, (B, BL), 0)
        col = jax.lax.broadcasted_iota(jnp.int32, (B, BL), 1)
        in_batch = (col >= row * L) & (col < (row + 1) * L)
        mask_g = jnp.where(in_batch, g, jnp.float32(0.0))          # (B, B*L)
        denom = jnp.sum(mask_g, axis=-1, keepdims=True) + 1e-8      # (B, 1)
        saf = jnp.dot(mask_g, x, preferred_element_type=jnp.float32) / denom

    # (4) l2norm over D (eps placed outside the sqrt, as in the reference).
    nrm = jnp.sqrt(jnp.sum(saf * saf, axis=-1, keepdims=True)) + 1e-8
    o_ref[...] = saf / nrm


def attention_filtration(sim_emb, w, b, *, use_segmented=None):
    """sim_emb: (B, L, D) f32, w: (1, D) f32, b: (1,) f32 -> (B, D) f32."""
    B, L, D = sim_emb.shape
    BL = B * L
    x2d = sim_emb.reshape(BL, D)          # lane-dense slab; done in XLA, free
    w_col = w.reshape(D, 1)               # (1, D) -> (D, 1) (layout only)

    if use_segmented is None:
        # Masked matmul is O(B^2*L*D); switch to the O(B*L*D) segmented reduce
        # once B is large enough to matter and the (B, L, D) view is
        # layout-preserving.
        use_segmented = (B >= 32) and (L % 8 == 0)

    # Scoped-VMEM budget: x + staging copies, plus the path-specific big
    # intermediate (mask on the matmul path, gated-x product on the segmented
    # path) and small slack.  Capped below physical VMEM with headroom for
    # Mosaic internal scratch (v7x has only 64 MiB per TensorCore).
    x_bytes = BL * D * 4
    mask_bytes = 0 if use_segmented else B * BL * 4
    gated_bytes = x_bytes if use_segmented else 0
    need = 3 * x_bytes + mask_bytes + gated_bytes + (2 << 20)
    try:
        phys = int(pltpu.get_tpu_info().vmem_capacity_bytes)
    except Exception:
        phys = 64 << 20                   # assume the smallest (v7x per-TC)
    cap = max(16 << 20, phys - (12 << 20))
    vmem_limit = int(min(cap, max(16 << 20, need)))

    agg_flops = 2 * BL * D if use_segmented else 2 * B * BL * D
    cost = pl.CostEstimate(
        flops=2 * BL * D + agg_flops + 2 * B * D,
        transcendentals=BL + B + 1,
        bytes_accessed=x_bytes + B * D * 4 + D * 4,
    )

    kernel = functools.partial(_attention_filtration_kernel,
                               batch=B, length=L, use_segmented=use_segmented)
    return pl.pallas_call(
        kernel,
        out_shape=jax.ShapeDtypeStruct((B, D), jnp.float32),
        in_specs=[
            pl.BlockSpec(memory_space=pltpu.MemorySpace.VMEM),   # sim_emb (flattened)
            pl.BlockSpec(memory_space=pltpu.MemorySpace.VMEM),   # linear weight (D, 1)
            pl.BlockSpec(memory_space=pltpu.MemorySpace.SMEM),   # linear bias (scalar)
        ],
        out_specs=pl.BlockSpec(memory_space=pltpu.MemorySpace.VMEM),
        compiler_params=pltpu.CompilerParams(vmem_limit_bytes=vmem_limit),
        cost_estimate=cost,
    )(x2d, w_col, b)


def init_params(sim_dim, key):
    """Deterministic re-implementation of AttentionFiltration.init_weights()."""
    r = np.sqrt(6.0) / np.sqrt(sim_dim + 1)
    w = jax.random.uniform(key, (1, sim_dim), jnp.float32, minval=-r, maxval=r)
    b = jnp.zeros((1,), jnp.float32)
    # BatchNorm1d(1): weight=1, bias=0 (folded into the kernel as gamma=1, beta=0).
    return w, b


def reference_forward(sim_emb, w, b):
    """Pure-JAX reference mirroring the PyTorch forward (training-mode BN)."""
    s = jnp.einsum("bld,od->blo", sim_emb, w)[..., 0] + b[0]          # (B, L)
    mean = jnp.mean(s)
    var = jnp.mean((s - mean) ** 2)
    s_bn = (s - mean) / jnp.sqrt(var + 1e-5)
    a = jax.nn.sigmoid(s_bn)
    a = a / (jnp.sum(jnp.abs(a), axis=-1, keepdims=True) + 1e-8)
    saf = jnp.einsum("bl,bld->bd", a, sim_emb)
    return saf / (jnp.sqrt(jnp.sum(saf ** 2, axis=-1, keepdims=True)) + 1e-8)


if __name__ == "__main__":
    key = jax.random.PRNGKey(0)
    k_x, k_w, k_x2 = jax.random.split(key, 3)

    # Small shape (batch=2, L+1=8, sim_dim=256) -> masked-matmul path.
    B, L, D = 2, 8, 256
    sim_emb = jax.random.normal(k_x, (B, L, D), jnp.float32)
    w, b = init_params(D, k_w)

    out = jax.block_until_ready(attention_filtration(sim_emb, w, b))
    ref = reference_forward(sim_emb, w, b)
    np.testing.assert_allclose(np.asarray(out), np.asarray(ref),
                               rtol=1e-5, atol=1e-5)

    # Moderately larger shape (still tiny) -> exercises the segmented-reduce
    # path chosen automatically for B >= 32, L % 8 == 0.
    B2, L2 = 48, 40
    sim_emb2 = jax.random.normal(k_x2, (B2, L2, D), jnp.float32)
    out2 = jax.block_until_ready(attention_filtration(sim_emb2, w, b))
    ref2 = reference_forward(sim_emb2, w, b)
    np.testing.assert_allclose(np.asarray(out2), np.asarray(ref2),
                               rtol=1e-4, atol=1e-5)

    print("KERNEL_OK")
</pallas_src>

<mosaic_0001>
module attributes {stable_mosaic.version = 11 : i64} {
  func.func @_attention_filtration_kernel(%arg0: memref<16x256xf32, #tpu.memory_space<vmem>>, %arg1: memref<256x1xf32, #tpu.memory_space<vmem>>, %arg2: memref<1xf32, #tpu.memory_space<smem>>, %arg3: memref<2x256xf32, #tpu.memory_space<vmem>>) attributes {dimension_semantics = [], scalar_prefetch = 0 : i64, scratch_operands = 0 : i64, tpu.core_type = #tpu.core_type<tc>} {
    %c0 = arith.constant 0 : index
    %c0_0 = arith.constant 0 : index
    %0 = vector.load %arg0[%c0, %c0_0] : memref<16x256xf32, #tpu.memory_space<vmem>>, vector<16x256xf32>
    %c0_1 = arith.constant 0 : index
    %c0_2 = arith.constant 0 : index
    %1 = vector.load %arg1[%c0_1, %c0_2] : memref<256x1xf32, #tpu.memory_space<vmem>>, vector<256x1xf32>
    %c0_3 = arith.constant 0 : index
    %2 = memref.load %arg2[%c0_3] : memref<1xf32, #tpu.memory_space<smem>>
    %cst = arith.constant dense<0.000000e+00> : vector<16x1xf32>
    %3 = tpu.matmul %0, %1, %cst {dimension_numbers = #tpu.dot_dimension_numbers<[1], [0], [0], [1], [0, 0, 1, 1], [], []>} : vector<16x256xf32>, vector<256x1xf32>, vector<16x1xf32> -> vector<16x1xf32>
    %4 = vector.broadcast %2 : f32 to vector<16x1xf32>
    %5 = arith.addf %3, %4 : vector<16x1xf32>
    %6 = vector.shape_cast %5 : vector<16x1xf32> to vector<1x16xf32>
    %7 = vector.shape_cast %6 : vector<1x16xf32> to vector<1x1x16xf32>
    %cst_4 = arith.constant dense<0.000000e+00> : vector<1xf32>
    %8 = vector.multi_reduction <add>, %7, %cst_4 [1, 2] : vector<1x1x16xf32> to vector<1xf32>
    %9 = vector.shape_cast %8 : vector<1xf32> to vector<1x1x1xf32>
    %10 = vector.extract %9[0, 0, 0] : f32 from vector<1x1x1xf32>
    %11 = arith.mulf %6, %6 : vector<1x16xf32>
    %12 = vector.shape_cast %11 : vector<1x16xf32> to vector<1x1x16xf32>
    %cst_5 = arith.constant dense<0.000000e+00> : vector<1xf32>
    %13 = vector.multi_reduction <add>, %12, %cst_5 [1, 2] : vector<1x1x16xf32> to vector<1xf32>
    %14 = vector.shape_cast %13 : vector<1xf32> to vector<1x1x1xf32>
    %15 = vector.extract %14[0, 0, 0] : f32 from vector<1x1x1xf32>
    %cst_6 = arith.constant 1.600000e+01 : f32
    %16 = arith.divf %10, %cst_6 : f32
    %cst_7 = arith.constant 1.600000e+01 : f32
    %17 = arith.divf %15, %cst_7 : f32
    %18 = arith.mulf %16, %16 : f32
    %19 = arith.subf %17, %18 : f32
    %cst_8 = arith.constant 9.99999974E-6 : f32
    %20 = arith.addf %19, %cst_8 : f32
    %21 = math.rsqrt %20 : f32
    %22 = vector.broadcast %16 : f32 to vector<1x16xf32>
    %23 = arith.subf %6, %22 : vector<1x16xf32>
    %24 = vector.broadcast %21 : f32 to vector<1x16xf32>
    %25 = arith.mulf %23, %24 : vector<1x16xf32>
    %26 = arith.negf %25 : vector<1x16xf32>
    %27 = math.exp %26 : vector<1x16xf32>
    %cst_9 = arith.constant 1.000000e+00 : f32
    %28 = vector.broadcast %cst_9 : f32 to vector<1x16xf32>
    %29 = arith.addf %28, %27 : vector<1x16xf32>
    %30 = arith.divf %28, %29 : vector<1x16xf32>
    %31 = tpu.iota {dimensions = array<i32: 0>} : vector<2x16xi32>
    %32 = tpu.iota {dimensions = array<i32: 1>} : vector<2x16xi32>
    %c8_i32 = arith.constant 8 : i32
    %33 = vector.broadcast %c8_i32 : i32 to vector<2x16xi32>
    %34 = arith.muli %31, %33 : vector<2x16xi32>
    %35 = arith.cmpi sge, %32, %34 : vector<2x16xi32>
    %c1_i32 = arith.constant 1 : i32
    %36 = vector.broadcast %c1_i32 : i32 to vector<2x16xi32>
    %37 = arith.addi %31, %36 : vector<2x16xi32>
    %c8_i32_10 = arith.constant 8 : i32
    %38 = vector.broadcast %c8_i32_10 : i32 to vector<2x16xi32>
    %39 = arith.muli %37, %38 : vector<2x16xi32>
    %40 = arith.cmpi slt, %32, %39 : vector<2x16xi32>
    %41 = arith.andi %35, %40 : vector<2x16xi1>
    %cst_11 = arith.constant 0.000000e+00 : f32
    %42 = vector.shape_cast %30 : vector<1x16xf32> to vector<1x16xf32>
    %43 = vector.broadcast %42 : vector<1x16xf32> to vector<2x16xf32>
    %44 = vector.broadcast %cst_11 : f32 to vector<2x16xf32>
    %45 = arith.select %41, %43, %44 : vector<2x16xi1>, vector<2x16xf32>
    %cst_12 = arith.constant dense<0.000000e+00> : vector<2xf32>
    %46 = vector.multi_reduction <add>, %45, %cst_12 [1] : vector<2x16xf32> to vector<2xf32>
    %47 = vector.shape_cast %46 : vector<2xf32> to vector<2x1xf32>
    %cst_13 = arith.constant 9.99999993E-9 : f32
    %48 = vector.broadcast %cst_13 : f32 to vector<2x1xf32>
    %49 = arith.addf %47, %48 : vector<2x1xf32>
    %cst_14 = arith.constant dense<0.000000e+00> : vector<2x256xf32>
    %50 = tpu.matmul %45, %0, %cst_14 {dimension_numbers = #tpu.dot_dimension_numbers<[1], [0], [0], [1], [0, 0, 1, 1], [], []>} : vector<2x16xf32>, vector<16x256xf32>, vector<2x256xf32> -> vector<2x256xf32>
    %51 = vector.broadcast %49 : vector<2x1xf32> to vector<2x256xf32>
    %52 = arith.divf %50, %51 : vector<2x256xf32>
    %53 = arith.mulf %52, %52 : vector<2x256xf32>
    %cst_15 = arith.constant dense<0.000000e+00> : vector<2xf32>
    %54 = vector.multi_reduction <add>, %53, %cst_15 [1] : vector<2x256xf32> to vector<2xf32>
    %55 = vector.shape_cast %54 : vector<2xf32> to vector<2x1xf32>
    %56 = math.sqrt %55 : vector<2x1xf32>
    %cst_16 = arith.constant 9.99999993E-9 : f32
    %57 = vector.broadcast %cst_16 : f32 to vector<2x1xf32>
    %58 = arith.addf %56, %57 : vector<2x1xf32>
    %59 = vector.broadcast %58 : vector<2x1xf32> to vector<2x256xf32>
    %60 = arith.divf %52, %59 : vector<2x256xf32>
    %c0_17 = arith.constant 0 : index
    %c0_18 = arith.constant 0 : index
    %61 = vector.load %arg3[%c0_17, %c0_18] : memref<2x256xf32, #tpu.memory_space<vmem>>, vector<2x256xf32>
    tpu.vector_store %arg3[%c0_17, %c0_18], %60 {strides = array<i32>} : memref<2x256xf32, #tpu.memory_space<vmem>>, vector<2x256xf32>,
    return
  }
}

</mosaic_0001>

<bundles_post_ra>
// kernel: tpu_custom_call.1
= control target key start
LH: loop header
LB: loop body
LE: loop exit
PB: predicated region body
PF: predicated region fallthrough
CT: control target
= control target key end

     0   :  { %s693_s0 = inlined_call_operand.vmem [shape: f32[16,256], index: 0, kind: input, shape index: {}]   ;;  %s694_s1 = inlined_call_operand.vmem [shape: f32[256,1], index: 1, kind: input, shape index: {}]   ;;  %s695_s2 = inlined_call_operand.<no memory space> [shape: f32[1], index: 2, kind: input, shape index: {}]   ;;  %s696_s3 = inlined_call_operand.hbm [shape: f32[2,256], index: 3, kind: output, shape index: {}]  }
   0x1   :  { %v36_v0 = vld [vmem:[%s694_s1 + $0x80] sm:$0xff]  ;;  %v37_v1 = vld [vmem:[%s694_s1 + $0x88] sm:$0xff]  ;;  %v38_v5 = vld [vmem:[%s694_s1 + $0x90] sm:$0xff] }
   0x2   :  { %v20_v2 = vld [vmem:[%s694_s1] sm:$0xff]  ;;  %v419_v3 = vpack.c.bf16 %v37_v1, %v36_v0  ;;  %v21_v4 = vld [vmem:[%s694_s1 + $0x8] sm:$0xff]  ;;  %v39_v6 = vld [vmem:[%s694_s1 + $0x98] sm:$0xff] }
   0x3   :  { %v421_v7 = vpack.c.bf16 %v21_v4, %v20_v2  ;;  %v423_v8 = vpack.c.bf16 %v39_v6, %v38_v5  ;;  %v22_v9 = vld [vmem:[%s694_s1 + $0x10] sm:$0xff]  ;;  %v23_v10 = vld [vmem:[%s694_s1 + $0x18] sm:$0xff]  ;;  %v40_v11 = vld [vmem:[%s694_s1 + $0xa0] sm:$0xff] }
   0x4   :  { %420 = vmatprep.subr.bf16.mxu0 %v419_v3  ;;  %v41_v12 = vld [vmem:[%s694_s1 + $0xa8] sm:$0xff]  ;;  %v425_v13 = vpack.c.bf16 %v23_v10, %v22_v9  ;;  %v24_v15 = vld [vmem:[%s694_s1 + $0x20] sm:$0xff]  ;;  %v42_v17 = vld [vmem:[%s694_s1 + $0xb0] sm:$0xff] }
   0x5   :  { %422 = vmatpush3.bf16.msra.mxu0 %v421_v7  ;;  %v427_v14 = vpack.c.bf16 %v41_v12, %v40_v11  ;;  %v25_v16 = vld [vmem:[%s694_s1 + $0x28] sm:$0xff]  ;;  %v43_v18 = vld [vmem:[%s694_s1 + $0xb8] sm:$0xff]  ;;  %v26_v21 = vld [vmem:[%s694_s1 + $0x30] sm:$0xff] }
   0x6   :  { %424 = vmatprep.subr.bf16.mxu0 %v423_v8  ;;  %v429_v19 = vpack.c.bf16 %v25_v16, %v24_v15  ;;  %v431_v20 = vpack.c.bf16 %v43_v18, %v42_v17  ;;  %v27_v22 = vld [vmem:[%s694_s1 + $0x38] sm:$0xff]  ;;  %v44_v23 = vld [vmem:[%s694_s1 + $0xc0] sm:$0xff]  ;;  %v45_v24 = vld [vmem:[%s694_s1 + $0xc8] sm:$0xff] }
   0x7   :  { %v586_v25 = vld [vmem:[%s693_s0 + $0x8] sm:$0xff]  ;;  %v433_v26 = vpack.c.bf16 %v27_v22, %v26_v21 }
   0x8   :  { %118 = vmatprep.mubr.f32.mxu0 %v586_v25 }
   0x9   :  { %426 = vmatpush3.bf16.msra.mxu0 %v425_v13 }
   0xa   :  { %428 = vmatprep.subr.bf16.mxu0 %v427_v14 }
   0xd   :  { %430 = vmatpush3.bf16.msra.mxu0 %v429_v19 }
   0xe   :  { %9 = vsyncpa [#allocation4], 0  ;;  %432 = vmatprep.subr.bf16.mxu0 %v431_v20  ;;  %v435_v27 = vpack.c.bf16 %v45_v24, %v44_v23  ;;  %v28_v28 = vld [vmem:[%s694_s1 + $0x40] sm:$0xff]  ;;  %v29_v29 = vld [vmem:[%s694_s1 + $0x48] sm:$0xff]  ;;  %v506_v52 = vmov 0   ;;  %v53_v54 = vstv %s695_s2  ;;  %v137_v0 = vlaneseq  ;;  %s508_s10 = smov [#allocation3]  }
   0xf   :  { %v46_v30 = vld [vmem:[%s694_s1 + $0xd0] sm:$0xff]  ;;  %v47_v31 = vld [vmem:[%s694_s1 + $0xd8] sm:$0xff]  ;;  %v437_v32 = vpack.c.bf16 %v29_v29, %v28_v28  ;;  %v48_v36 = vld [vmem:[%s694_s1 + $0xe0] sm:$0xff]  ;;  %464 = vset.pattern.permute.xlu0 %v506_v52  ;;  %465 = vset.pattern.permute.xlu1 %v506_v52  ;;  %vm148_vm0 = vcmask 130112   ;;  %vm151_vm1 = vcmask 122880   ;;  %vm254_vm5 = vcmask 130048  }
  0x10   :  { %v439_v33 = vpack.c.bf16 %v47_v31, %v46_v30  ;;  %v30_v34 = vld [vmem:[%s694_s1 + $0x50] sm:$0xff]  ;;  %v31_v35 = vld [vmem:[%s694_s1 + $0x58] sm:$0xff]  ;;  %v49_v37 = vld [vmem:[%s694_s1 + $0xe8] sm:$0xff]  ;;  %v652_v1 = vand.u32 127, %v137_v0  ;;  %v654_v2 = vshrl.u32 %v137_v0, 7  ;;  %vm249_vm6 = vcmask 123904  }
  0x11   :  { %434 = vmatpush3.bf16.msra.mxu0 %v433_v26  ;;  %v441_v38 = vpack.c.bf16 %v31_v35, %v30_v34  ;;  %v443_v39 = vpack.c.bf16 %v49_v37, %v48_v36  ;;  %v32_v40 = vld [vmem:[%s694_s1 + $0x60] sm:$0xff]  ;;  %v33_v41 = vld [vmem:[%s694_s1 + $0x68] sm:$0xff]  ;;  %v50_v42 = vld [vmem:[%s694_s1 + $0xf0] sm:$0xff]  ;;  %vm334_vm7 = vcmask 1041408   ;;  %s369_s11 = sshll.u32 %s508_s10, 4  ;;  %s370_s11 = int_to_ptr.vmem [resolvable:$true] %s369_s11 }
  0x12   :  { %436 = vmatprep.subr.bf16.mxu0 %v435_v27  ;;  %v51_v43 = vld [vmem:[%s694_s1 + $0xf8] sm:$0xff]  ;;  %v445_v44 = vpack.c.bf16 %v33_v41, %v32_v40  ;;  %v34_v46 = vld [vmem:[%s694_s1 + $0x70] sm:$0xff]  ;;  %v634_v49 = vld [vmem:[%s693_s0] sm:$0xff]  ;;  %v143_v3 = vadd.s32 4294967288, %v652_v1  ;;  %v659_v5 = vsub.s32 %v652_v1, %v654_v2  ;;  %s482_s12 = scalar_lea.vmem %s370_s11, 64  ;;  %p487_p1 = scmp.lt.s32.totalorder %s370_s11, %s370_s11 }
  0x13   :  { %v447_v45 = vpack.c.bf16 %v51_v43, %v50_v42  ;;  %v35_v47 = vld [vmem:[%s694_s1 + $0x78] sm:$0xff]  ;;  %v646_v51 = vld [vmem:[%s693_s0 + $0x10] sm:$0xff]  ;;  %p483_p0 = scmp.ne.s32.totalorder %s370_s11, %s482_s12  ;;  %p488_p2 = scmp.lt.s32.totalorder %s482_s12, %s482_s12 }
  0x14   :  { %v449_v48 = vpack.c.bf16 %v35_v47, %v34_v46  ;;  %v639_v50 = vld [vmem:[%s693_s0 + $0x18] sm:$0xff]  ;;  %v662_v6 = vsub.s32 %v143_v3, %v654_v2 }
  0x15   :  { %438 = vmatpush3.bf16.msra.mxu0 %v437_v32  ;;  %p489_p3 = por %p488_p2, %p487_p1 }
  0x16   :  { %440 = vmatprep.subr.bf16.mxu0 %v439_v33 }
  0x17   :  { %p490_p4 = pnand %p489_p3, %p483_p0 }
  0x19   :  { %442 = vmatpush3.bf16.msra.mxu0 %v441_v38 }
  0x1a   :  { %444 = vmatprep.subr.bf16.mxu0 %v443_v39 }
  0x1d   :  { %446 = vmatpush3.bf16.msra.mxu0 %v445_v44 }
  0x1e   :  { %448 = vmatprep.subr.bf16.mxu0 %v447_v45 }
  0x21   :  { %450 = vmatpush3.bf16.msra.mxu0 %v449_v48  ;;  %v451_v48 = vpack.c.bf16 %v639_v50, %v586_v25 }
  0x23   :  { %452 = vmatprep.subr.bf16.mxu1 %v451_v48 }
  0x24   :  { %119 = vmatmul.mubr.f32.vlgmr.msra.gmra.mrb[0].mxu0 %v634_v49 }
  0x25   :  { %123 = vmatprep.mubr.f32.mxu0 %v639_v50 }
  0x28   :  { %124 = vmatmul.mubr.f32.gmra.mrb[2].mxu0 %v646_v51 }
  0xf7   :  { %v413_v53 = vpop.f32.mrb[0].mxu0 }
  0xf8   :  { %v414_v55 = vpop.f32.mrb[1].mxu0 }
  0xf9   :  { %v415_v56 = vadd.f32 %v414_v55, %v413_v53  ;;  %v453_v53 = vpack.c.bf16 %v646_v51, %v634_v49  ;;  %v226_v55 = vadd.s32 1, %v654_v2 }
  0xfb   :  { %v121_v57 = vadd.f32 %v415_v56, %v53_v54  ;;  %v416_v58 = vpop.f32.mrb[2].mxu0  ;;  %454 = vmatpush1.bf16.msra.mxu1 %v453_v53  ;;  %v224_v56 = vmul.u32 8, %v654_v2 }
  0xfc   :  { %v417_v59 = vpop.f32.mrb[3].mxu0 }
  0xfd   :  { %v418_v60 = vadd.f32 %v417_v59, %v416_v58  ;;  %132 = vperm.xlu0 %464, %v121_v57   ;;  %v162_v61 = vmul.f32 %v121_v57, %v121_v57  ;;  %vm225_vm2 = vcmp.ge.s32.totalorder %v652_v1, %v224_v56 }
  0xff   :  { %v126_v62 = vadd.f32 %v418_v60, %v53_v54  ;;  %167 = vperm.xlu1 %465, %v162_v61   ;;  %v507_v54 = vmov 0.0  }
 0x100   :  { %322 = vmatprep.mubr.f32.mxu1 %v507_v54 }
 0x101   :  { %135 = vperm.xlu0 %464, %v126_v62   ;;  %v163_v63 = vmul.f32 %v126_v62, %v126_v62 }
 0x103   :  { %170 = vperm.xlu1 %465, %v163_v63  }
 0x17c   :  { %v133_v4 = vpop.permute.xlu0 %132 }
 0x17d   :  { %v142_v9 = vrot.slane %v133_v4, %v659_v5 }
 0x17e   :  { %v168_v7 = vpop.permute.xlu1 %167 }
 0x17f   :  { %v175_v12 = vrot.slane %v168_v7, %v659_v5 }
 0x180   :  { %v136_v8 = vpop.permute.xlu0 %135 }
 0x181   :  { %v147_v10 = vrot.slane %v136_v8, %v662_v6 }
 0x182   :  { %v171_v11 = vpop.permute.xlu1 %170 }
 0x183   :  { %v179_v13 = vrot.slane %v171_v11, %v662_v6  ;;  %v149_v14 = vsel %vm148_vm0, %v147_v10, %v142_v9 }
 0x184   :  { %v152_v15 = vsel %vm151_vm1, %v149_v14, 0.0 }
 0x185   :  { %153 = vadd.xlane.f32.xlu0 %v152_v15  ;;  %v180_v16 = vsel %vm148_vm0, %v179_v13, %v175_v12 }
 0x186   :  { %v182_v17 = vsel %vm151_vm1, %v180_v16, 0.0 }
 0x187   :  { %183 = vadd.xlane.f32.xlu1 %v182_v17 }
 0x212   :  { %v154_v18 = vpop.xlane.xlu0 %153 }
 0x213   :  { %v155_v19 = vrot.slane %v154_v18, 4 }
 0x214   :  { %v184_v20 = vpop.xlane.xlu1 %183 }
 0x215   :  { %v156_v21 = vadd.f32 %v155_v19, %v154_v18  ;;  %v185_v22 = vrot.slane %v184_v20, 4 }
 0x217   :  { %v157_v23 = vrot.slane %v156_v21, 2  ;;  %v186_v24 = vadd.f32 %v185_v22, %v184_v20 }
 0x219   :  { %v187_v26 = vrot.slane %v186_v24, 2  ;;  %v158_v27 = vadd.f32 %v157_v23, %v156_v21 }
 0x21b   :  { %v159_v28 = vrot.slane %v158_v27, 1  ;;  %v188_v29 = vadd.f32 %v187_v26, %v186_v24 }
 0x21d   :  { %v160_v30 = vadd.f32 %v159_v28, %v158_v27  ;;  %v189_v31 = vrot.slane %v188_v29, 1 }
 0x21f   :  { %455 = vpush %v160_v30  ;;  %v190_v32 = vadd.f32 %v189_v31, %v188_v29 }
 0x221   :  { %457 = vpush %v190_v32 }
 0x250   :  { %s456_s0 = spop %455 }
 0x251   :  { %s194_s2 = smul.f32 0.0625, %s456_s0 }
 0x252   :  { %s458_s4 = spop %457 }
 0x253   :  { %s198_s5 = smul.f32 %s194_s2, %s194_s2  ;;  %v204_v35 = vstv %s194_s2 }
 0x254   :  { %s197_s6 = smul.f32 0.0625, %s458_s4  ;;  %v205_v36 = vsub.f32 %v121_v57, %v204_v35  ;;  %v206_v37 = vsub.f32 %v126_v62, %v204_v35  ;;  %v227_v57 = vmul.u32 8, %v226_v55 }
 0x256   :  { %s199_s7 = ssub.f32 %s197_s6, %s198_s5  ;;  %vm228_vm3 = vcmp.lt.s32.totalorder %v652_v1, %v227_v57 }
 0x257   :  { %vm229_vm4 = vmand %vm225_vm2, %vm228_vm3 }
 0x258   :  { %s200_s8 = sadd.f32 1e-05, %s199_s7 }
 0x25a   :  { %v201_v33 = vstv %s200_s8 }
 0x25b   :  { %466 = vrsqrt.f32 %v201_v33 }
 0x265   :  { %v467_v34 = vpop.eup %466 }
 0x266   :  { %459 = vpush %v467_v34 }
 0x297   :  { %s460_s9 = spop %459 }
 0x298   :  { %v207_v38 = vstv %s460_s9 }
 0x299   :  { %v208_v39 = vmul.f32 %v207_v38, %v205_v36  ;;  %v209_v40 = vmul.f32 %v207_v38, %v206_v37 }
 0x29b   :  { %v377_v41 = vmul.f32 -1.442695, %v208_v39  ;;  %v378_v42 = vmul.f32 -1.442695, %v209_v40 }
 0x29d   :  { %468 = vpow2.f32 %v377_v41 }
 0x29e   :  { %470 = vpow2.f32 %v378_v42 }
 0x2a7   :  { %v469_v43 = vpop.eup %468 }
 0x2a8   :  { %v471_v44 = vpop.eup %470  ;;  %v216_v45 = vadd.f32 1.0, %v469_v43 }
 0x2a9   :  { %v217_v46 = vadd.f32 1.0, %v471_v44 }
 0x2aa   :  { %472 = vrcp.f32 %v216_v45 }
 0x2ab   :  { %474 = vrcp.f32 %v217_v46 }
 0x2b4   :  { %v473_v47 = vpop.eup %472 }
 0x2b5   :  { %v475_v52 = vpop.eup %474  ;;  %233 = vperm.xlu0 %464, %v473_v47  }
 0x2b6   :  { %236 = vperm.xlu1 %465, %v475_v52  }
 0x334   :  { %v234_v25 = vpop.permute.xlu0 %233 }
 0x335   :  { %v237_v50 = vpop.permute.xlu1 %236  ;;  %v241_v58 = vrot.slane %v234_v25, %v659_v5 }
 0x336   :  { %v245_v49 = vrot.slane %v237_v50, %v662_v6 }
 0x338   :  { %v246_v51 = vsel %vm148_vm0, %v245_v49, %v241_v58 }
 0x339   :  { %v248_v59 = vsel %vm229_vm4, %v246_v51, 0.0 }
 0x33a   :  { %379 = vmatmul.mubr.msk.f32.vlgmr.msra.gmra.mrb[0].mxu1 %vm254_vm5, %v248_v59  ;;  %v250_v60 = vsel %vm249_vm6, %v248_v59, 0.0 }
 0x33b   :  { %251 = vadd.xlane.f32.xlu0 %v250_v60 }
 0x3c8   :  { %v252_v61 = vpop.xlane.xlu0 %251 }
 0x3c9   :  { %v253_v62 = vadd.f32 1e-08, %v252_v61 }
 0x3cb   :  { %476 = vrcp.f32 %v253_v62 }
 0x3d5   :  { %v477_v63 = vpop.eup %476 }
 0x40d   :  { %v324_v0 = vpop.f32.mrb[0].mxu1 }
 0x40e   :  { %v330_v1 = vmul.f32 %v477_v63, %v324_v0  ;;  %v326_v2 = vpop.f32.mrb[1].mxu1 }
 0x40f   :  { %v331_v3 = vmul.f32 %v477_v63, %v326_v2 }
 0x410   :  { %v332_v4 = vmul.f32 %v330_v1, %v330_v1 }
 0x411   :  { %v333_v5 = vmul.f32 %v331_v3, %v331_v3 }
 0x412   :  { %v335_v6 = vsel %vm334_vm7, %v332_v4, 0.0 }
 0x413   :  { %v336_v7 = vsel %vm334_vm7, %v333_v5, 0.0 }
 0x414   :  { %v337_v8 = vadd.f32 %v336_v7, %v335_v6 }
 0x416   :  { %338 = vadd.xlane.f32.xlu1 %v337_v8 }
 0x4a3   :  { %v339_v9 = vpop.xlane.xlu1 %338 }
 0x4a4   :  { %478 = vrsqrt.f32 %v339_v9  ;;  %vm342_vm8 = vcmp.eq.f32.partialorder %v339_v9, inf  ;;  %v345_v12 = vand.u32 2147483648, %v339_v9  ;;  %vm344_vm9 = vcmp.eq.f32.partialorder %v339_v9, 0.0 }
 0x4ae   :  { %v479_v10 = vpop.eup %478 }
 0x4af   :  { %v341_v11 = vmul.f32 %v479_v10, %v339_v9 }
 0x4b1   :  { %v343_v13 = vsel %vm342_vm8, %v339_v9, %v341_v11 }
 0x4b2   :  { %v346_v14 = vsel %vm344_vm9, %v345_v12, %v343_v13 }
 0x4b3   :  { %v347_v15 = vadd.f32 1e-08, %v346_v14 }
 0x4b5   :  { %480 = vrcp.f32 %v347_v15 }
 0x4bf   :  { %v481_v16 = vpop.eup %480 }
 0x4c0   :  { %v349_v17 = vmul.f32 %v481_v16, %v330_v1  ;;  %v350_v18 = vmul.f32 %v481_v16, %v331_v3 }
 0x4c2   :  { %v353_v19 = vcombine.low %v349_v17, %v350_v18 }
 0x4c4   :  { %380 = vst.sshfl [vmem:[#allocation3] sm:$0x33 pattern:$0x76325410] %v353_v19 }
 0x4c5   :  { %493 = shalt.err (!%p490_p4)
}
 0x4c6   :  { %s494_s15 = scalar_lea.hbm %s696_s3, 64 }
 0x4c7   :  { %p495_p5 = scmp.ne.s32.totalorder %s696_s3, %s494_s15  ;;  %p498_p6 = scmp.lt.u32.totalorder %s494_s15, %s696_s3 }
 0x4c9   :  { %p500_p7 = pnand %p498_p6, %p495_p5 }
 0x4cb   :  { %503 = shalt.err (!%p500_p7)
}
 0x4cc   :  { %372 = dma.vmem_to_hbm [thread:$0]  %s370_s11, 64, %s696_s3, [#allocation4]  }
 0x4cd   :  { %504 = dma.done.wait [#allocation4], 64  }
 0x4ce   :  { %505 = vsyncadd [#allocation4], 4294967232 }
 0x4cf   :  { %376 = vsyncpa [#allocation4], 1 }

</bundles_post_ra>
